<compile_context>
chip_gen: v5e
topology: v5e:2x2
jax: 0.10.0
libtpu: 0.0.40
codegen_flags: <defaults>
</compile_context>

<pallas_src>
import functools

import jax
import jax.numpy as jnp
from jax import lax
from jax.experimental import pallas as pl
from jax.experimental.pallas import tpu as pltpu


def _round_up(n, m):
    return (n + m - 1) // m * m


def _pick_vmem_limit_bytes():
    # ~3/4 of physical VMEM, capped at 96 MiB:
    #   v7x (64 MiB)  -> 48 MiB,   v5e/v6e (128 MiB) -> 96 MiB.
    try:
        cap = int(pltpu.get_tpu_info().vmem_capacity_bytes)
    except Exception:
        cap = 64 * 1024 * 1024  # conservative (v7x-sized) fallback
    return min((cap * 3) // 4, 96 * 1024 * 1024)


def attention_kernel(x_ref, wqkv_ref, bqkv_ref, wproj_ref, bproj_ref, o_ref,
                     merge_ref, *, num_heads, seq_len):
    # x_ref:     (1, Lp, D) bf16 tile for one batch element.
    # wqkv_ref:  (D, 3D) bf16, pre-transposed, scale folded into q columns.
    # bqkv_ref:  (1, 3D) f32 (scaled).
    # wproj_ref: (D, D) bf16, pre-transposed.   bproj_ref: (1, D) f32.
    # merge_ref: (Lp, D) f32 VMEM scratch (head-merge buffer).
    Lp = x_ref.shape[1]
    D = x_ref.shape[2]
    hd = D // num_heads

    x = x_ref[0]                                                  # (Lp, D) bf16

    # Fused qkv projection on the MXU: bf16 operands, f32 accumulation.
    qkv_f32 = jnp.dot(x, wqkv_ref[...],
                      preferred_element_type=jnp.float32)        # (Lp, 3D) f32
    qkv_f32 = qkv_f32 + bqkv_ref[0]
    qkv = qkv_f32.astype(jnp.bfloat16)                           # MXU operands

    # Key-padding mask (only materialized when L was padded up to Lp).
    if Lp > seq_len:
        key_ids = lax.broadcasted_iota(jnp.int32, (Lp, Lp), 1)
        key_mask = jnp.where(key_ids < seq_len, 0.0, -1e30).astype(jnp.float32)

    # Per-head attention; each head's result goes straight into the merge
    # scratch at its column offset (no head_outs list, no concatenate).
    for h in range(num_heads):
        q = qkv[:, 0 * D + h * hd:0 * D + (h + 1) * hd]          # (Lp, hd), scale folded
        k = qkv[:, 1 * D + h * hd:1 * D + (h + 1) * hd]          # (Lp, hd)
        v = qkv[:, 2 * D + h * hd:2 * D + (h + 1) * hd]          # (Lp, hd)

        # scores: q @ k^T (contract dim 1 vs 1, no transpose materialized).
        s = lax.dot_general(q, k, (((1,), (1,)), ((), ())),
                            preferred_element_type=jnp.float32)  # (Lp, Lp) f32
        if Lp > seq_len:
            s = s + key_mask

        # softmax over keys in f32; reciprocal on the EUP.
        s = s - jnp.max(s, axis=-1, keepdims=True)
        p = jnp.exp(s)
        p = p * pl.reciprocal(jnp.sum(p, axis=-1, keepdims=True), approx=True)

        # weighted values: bf16 operands, f32 accumulation; store into scratch.
        out_h = jnp.dot(p.astype(jnp.bfloat16), v,
                        preferred_element_type=jnp.float32)      # (Lp, hd) f32
        merge_ref[:, h * hd:(h + 1) * hd] = out_h

    # Output projection: bf16 operands, f32 accumulation.
    merged = merge_ref[...].astype(jnp.bfloat16)                 # (Lp, D)
    proj = jnp.dot(merged, wproj_ref[...],
                   preferred_element_type=jnp.float32)
    proj = proj + bproj_ref[0]
    o_ref[0] = proj.astype(o_ref.dtype)


def attention_forward(x, w_qkv, b_qkv, w_proj, b_proj, *, num_heads):
    """x: (B, L, D); w_qkv: (3D, D); b_qkv: (1, 3D); w_proj: (D, D); b_proj: (1, D)."""
    B, L, D = x.shape
    assert D % num_heads == 0
    hd = D // num_heads
    scale = hd ** (-0.5)

    # One-time wrapper-side layout / dtype work (plain XLA, outside the kernel):
    #  - fold `scale` into the q rows of W_qkv / q slice of b_qkv,
    #  - pre-transpose weights to (in_features, out_features),
    #  - cast MXU operands (x, weights) to bf16; biases stay f32.
    scale_vec = jnp.concatenate(
        [jnp.full((D,), scale, dtype=jnp.float32),
         jnp.ones((2 * D,), dtype=jnp.float32)])
    w_qkv_t = (w_qkv.astype(jnp.float32) * scale_vec[:, None]).T.astype(jnp.bfloat16)
    b_qkv_s = b_qkv.astype(jnp.float32) * scale_vec[None, :]      # (1, 3D) f32
    w_proj_t = w_proj.T.astype(jnp.bfloat16)                      # (D, D) bf16
    b_proj_f = b_proj.astype(jnp.float32)                         # (1, D) f32
    x_bf16 = x.astype(jnp.bfloat16)

    # Pad L to a sublane multiple; padded keys are masked inside the kernel.
    Lp = _round_up(L, 8)
    if Lp != L:
        x_bf16 = jnp.pad(x_bf16, ((0, 0), (0, Lp - L), (0, 0)))

    kernel = functools.partial(attention_kernel, num_heads=num_heads, seq_len=L)

    out = pl.pallas_call(
        kernel,
        out_shape=jax.ShapeDtypeStruct((B, Lp, D), x.dtype),
        grid_spec=pltpu.PrefetchScalarGridSpec(
            num_scalar_prefetch=0,
            grid=(B,),  # one grid step per batch element
            in_specs=[
                pl.BlockSpec((1, Lp, D), lambda b: (b, 0, 0)),    # x tile (bf16)
                pl.BlockSpec((D, 3 * D), lambda b: (0, 0)),       # W_qkv^T bf16 (resident)
                pl.BlockSpec((1, 3 * D), lambda b: (0, 0)),       # b_qkv f32 (scaled)
                pl.BlockSpec((D, D), lambda b: (0, 0)),           # W_proj^T bf16 (resident)
                pl.BlockSpec((1, D), lambda b: (0, 0)),           # b_proj f32
            ],
            out_specs=pl.BlockSpec((1, Lp, D), lambda b: (b, 0, 0)),
            scratch_shapes=[pltpu.VMEM((Lp, D), jnp.float32)],    # head-merge buffer
        ),
        compiler_params=pltpu.CompilerParams(
            dimension_semantics=("parallel",),
            vmem_limit_bytes=_pick_vmem_limit_bytes()),
    )(x_bf16, w_qkv_t, b_qkv_s, w_proj_t, b_proj_f)

    if Lp != L:
        out = out[:, :L, :]
    return out


def attention_reference(x, w_qkv, b_qkv, w_proj, b_proj, *, num_heads):
    """Pure-JAX f32 reference mirroring the PyTorch forward (non-xformers path)."""
    B, L, D = x.shape
    hd = D // num_heads
    scale = hd ** (-0.5)
    qkv = x @ w_qkv.T + b_qkv[0]                                   # (B, L, 3D)
    qkv = qkv.reshape(B, L, 3, num_heads, hd).transpose(2, 0, 3, 1, 4)
    q, k, v = qkv.reshape(3, B * num_heads, L, hd)
    attn = (q * scale) @ jnp.swapaxes(k, -2, -1)
    attn = jax.nn.softmax(attn, axis=-1)
    out = attn @ v
    out = out.reshape(B, num_heads, L, hd).transpose(0, 2, 1, 3).reshape(B, L, D)
    return out @ w_proj.T + b_proj[0]


if __name__ == "__main__":
    B, L, D = 2, 8, 32
    num_heads = 8  # module default; head_dim = 4

    key = jax.random.PRNGKey(0)
    k_x, k_wq, k_bq, k_wp, k_bp = jax.random.split(key, 5)

    x = jax.random.normal(k_x, (B, L, D), dtype=jnp.float32)
    # nn.Linear(dim, 3*dim, bias=True) and nn.Linear(dim, dim) conventions.
    w_qkv = jax.random.normal(k_wq, (3 * D, D), dtype=jnp.float32) * 0.05
    b_qkv = jax.random.normal(k_bq, (1, 3 * D), dtype=jnp.float32) * 0.05
    w_proj = jax.random.normal(k_wp, (D, D), dtype=jnp.float32) * 0.05
    b_proj = jax.random.normal(k_bp, (1, D), dtype=jnp.float32) * 0.05

    out = attention_forward(x, w_qkv, b_qkv, w_proj, b_proj, num_heads=num_heads)
    out = jax.block_until_ready(out)

    ref = attention_reference(x, w_qkv, b_qkv, w_proj, b_proj, num_heads=num_heads)
    assert out.shape == (B, L, D)
    # Tolerance accounts for intentional bf16 MXU operands (f32 accumulation)
    # and the EUP approximate reciprocal in the softmax normalization.
    assert jnp.allclose(out, ref, atol=2e-2, rtol=2e-2), "mismatch vs reference"

    print("KERNEL_OK")
</pallas_src>

<mosaic_0001>
module attributes {stable_mosaic.version = 11 : i64} {
  func.func @attention_kernel(%arg0: i32, %arg1: memref<1x8x32xbf16, #tpu.memory_space<vmem>>, %arg2: memref<32x96xbf16, #tpu.memory_space<vmem>>, %arg3: memref<1x96xf32, #tpu.memory_space<vmem>>, %arg4: memref<32x32xbf16, #tpu.memory_space<vmem>>, %arg5: memref<1x32xf32, #tpu.memory_space<vmem>>, %arg6: memref<1x8x32xf32, #tpu.memory_space<vmem>>, %arg7: memref<8x32xf32, #tpu.memory_space<vmem>>) attributes {dimension_semantics = [#tpu.dimension_semantics<parallel>], iteration_bounds = array<i64: 2>, scalar_prefetch = 0 : i64, scratch_operands = 1 : i64, tpu.core_type = #tpu.core_type<tc>, window_params = [{transform_indices = @transform_0, window_bounds = array<i64: 1, 8, 32>}, {pipeline_mode = #tpu.pipeline_mode<synchronous>, transform_indices = @transform_1, window_bounds = array<i64: 32, 96>}, {pipeline_mode = #tpu.pipeline_mode<synchronous>, transform_indices = @transform_2, window_bounds = array<i64: 1, 96>}, {pipeline_mode = #tpu.pipeline_mode<synchronous>, transform_indices = @transform_3, window_bounds = array<i64: 32, 32>}, {pipeline_mode = #tpu.pipeline_mode<synchronous>, transform_indices = @transform_4, window_bounds = array<i64: 1, 32>}, {transform_indices = @transform_5, window_bounds = array<i64: 1, 8, 32>}]} {
    %c0 = arith.constant 0 : index
    %c0_0 = arith.constant 0 : index
    %c0_1 = arith.constant 0 : index
    %0 = vector.load %arg1[%c0, %c0_0, %c0_1] : memref<1x8x32xbf16, #tpu.memory_space<vmem>>, vector<1x8x32xbf16>
    %1 = vector.shape_cast %0 : vector<1x8x32xbf16> to vector<8x32xbf16>
    %c0_2 = arith.constant 0 : index
    %c0_3 = arith.constant 0 : index
    %2 = vector.load %arg2[%c0_2, %c0_3] : memref<32x96xbf16, #tpu.memory_space<vmem>>, vector<32x96xbf16>
    %cst = arith.constant dense<0.000000e+00> : vector<8x96xf32>
    %3 = tpu.matmul %1, %2, %cst {dimension_numbers = #tpu.dot_dimension_numbers<[1], [0], [0], [1], [0, 0, 1, 1], [], []>} : vector<8x32xbf16>, vector<32x96xbf16>, vector<8x96xf32> -> vector<8x96xf32>
    %c0_4 = arith.constant 0 : index
    %c0_5 = arith.constant 0 : index
    %4 = vector.load %arg3[%c0_4, %c0_5] : memref<1x96xf32, #tpu.memory_space<vmem>>, vector<1x96xf32>
    %5 = vector.shape_cast %4 : vector<1x96xf32> to vector<96xf32>
    %6 = vector.shape_cast %5 : vector<96xf32> to vector<1x96xf32>
    %7 = vector.broadcast %6 : vector<1x96xf32> to vector<8x96xf32>
    %8 = arith.addf %3, %7 : vector<8x96xf32>
    %9 = arith.truncf %8 : vector<8x96xf32> to vector<8x96xbf16>
    %10 = vector.extract_strided_slice %9 {offsets = [0, 0], sizes = [8, 4], strides = [1, 1]} : vector<8x96xbf16> to vector<8x4xbf16>
    %11 = vector.extract_strided_slice %9 {offsets = [0, 32], sizes = [8, 4], strides = [1, 1]} : vector<8x96xbf16> to vector<8x4xbf16>
    %12 = vector.extract_strided_slice %9 {offsets = [0, 64], sizes = [8, 4], strides = [1, 1]} : vector<8x96xbf16> to vector<8x4xbf16>
    %cst_6 = arith.constant dense<0.000000e+00> : vector<8x8xf32>
    %13 = tpu.matmul %10, %11, %cst_6 {dimension_numbers = #tpu.dot_dimension_numbers<[1], [1], [0], [0], [0, 0, 1, 0], [], []>} : vector<8x4xbf16>, vector<8x4xbf16>, vector<8x8xf32> -> vector<8x8xf32>
    %cst_7 = arith.constant dense<0xFF800000> : vector<8xf32>
    %14 = vector.multi_reduction <maximumf>, %13, %cst_7 [1] : vector<8x8xf32> to vector<8xf32>
    %15 = vector.shape_cast %14 : vector<8xf32> to vector<8x1xf32>
    %16 = vector.broadcast %15 : vector<8x1xf32> to vector<8x8xf32>
    %17 = arith.subf %13, %16 : vector<8x8xf32>
    %18 = math.exp %17 : vector<8x8xf32>
    %cst_8 = arith.constant dense<0.000000e+00> : vector<8xf32>
    %19 = vector.multi_reduction <add>, %18, %cst_8 [1] : vector<8x8xf32> to vector<8xf32>
    %20 = vector.shape_cast %19 : vector<8xf32> to vector<8x1xf32>
    %21 = tpu.reciprocal %20 {approx = true} : vector<8x1xf32> -> vector<8x1xf32>
    %22 = vector.broadcast %21 : vector<8x1xf32> to vector<8x8xf32>
    %23 = arith.mulf %18, %22 : vector<8x8xf32>
    %24 = arith.truncf %23 : vector<8x8xf32> to vector<8x8xbf16>
    %cst_9 = arith.constant dense<0.000000e+00> : vector<8x4xf32>
    %25 = tpu.matmul %24, %12, %cst_9 {dimension_numbers = #tpu.dot_dimension_numbers<[1], [0], [0], [1], [0, 0, 1, 1], [], []>} : vector<8x8xbf16>, vector<8x4xbf16>, vector<8x4xf32> -> vector<8x4xf32>
    %c0_10 = arith.constant 0 : index
    %c0_11 = arith.constant 0 : index
    %26 = vector.load %arg7[%c0_10, %c0_11] : memref<8x32xf32, #tpu.memory_space<vmem>>, vector<8x4xf32>
    tpu.vector_store %arg7[%c0_10, %c0_11], %25 {strides = array<i32>} : memref<8x32xf32, #tpu.memory_space<vmem>>, vector<8x4xf32>,
    %27 = vector.extract_strided_slice %9 {offsets = [0, 4], sizes = [8, 4], strides = [1, 1]} : vector<8x96xbf16> to vector<8x4xbf16>
    %28 = vector.extract_strided_slice %9 {offsets = [0, 36], sizes = [8, 4], strides = [1, 1]} : vector<8x96xbf16> to vector<8x4xbf16>
    %29 = vector.extract_strided_slice %9 {offsets = [0, 68], sizes = [8, 4], strides = [1, 1]} : vector<8x96xbf16> to vector<8x4xbf16>
    %cst_12 = arith.constant dense<0.000000e+00> : vector<8x8xf32>
    %30 = tpu.matmul %27, %28, %cst_12 {dimension_numbers = #tpu.dot_dimension_numbers<[1], [1], [0], [0], [0, 0, 1, 0], [], []>} : vector<8x4xbf16>, vector<8x4xbf16>, vector<8x8xf32> -> vector<8x8xf32>
    %cst_13 = arith.constant dense<0xFF800000> : vector<8xf32>
    %31 = vector.multi_reduction <maximumf>, %30, %cst_13 [1] : vector<8x8xf32> to vector<8xf32>
    %32 = vector.shape_cast %31 : vector<8xf32> to vector<8x1xf32>
    %33 = vector.broadcast %32 : vector<8x1xf32> to vector<8x8xf32>
    %34 = arith.subf %30, %33 : vector<8x8xf32>
    %35 = math.exp %34 : vector<8x8xf32>
    %cst_14 = arith.constant dense<0.000000e+00> : vector<8xf32>
    %36 = vector.multi_reduction <add>, %35, %cst_14 [1] : vector<8x8xf32> to vector<8xf32>
    %37 = vector.shape_cast %36 : vector<8xf32> to vector<8x1xf32>
    %38 = tpu.reciprocal %37 {approx = true} : vector<8x1xf32> -> vector<8x1xf32>
    %39 = vector.broadcast %38 : vector<8x1xf32> to vector<8x8xf32>
    %40 = arith.mulf %35, %39 : vector<8x8xf32>
    %41 = arith.truncf %40 : vector<8x8xf32> to vector<8x8xbf16>
    %cst_15 = arith.constant dense<0.000000e+00> : vector<8x4xf32>
    %42 = tpu.matmul %41, %29, %cst_15 {dimension_numbers = #tpu.dot_dimension_numbers<[1], [0], [0], [1], [0, 0, 1, 1], [], []>} : vector<8x8xbf16>, vector<8x4xbf16>, vector<8x4xf32> -> vector<8x4xf32>
    %c0_16 = arith.constant 0 : index
    %c4 = arith.constant 4 : index
    %43 = vector.load %arg7[%c0_16, %c4] : memref<8x32xf32, #tpu.memory_space<vmem>>, vector<8x4xf32>
    tpu.vector_store %arg7[%c0_16, %c4], %42 {strides = array<i32>} : memref<8x32xf32, #tpu.memory_space<vmem>>, vector<8x4xf32>,
    %44 = vector.extract_strided_slice %9 {offsets = [0, 8], sizes = [8, 4], strides = [1, 1]} : vector<8x96xbf16> to vector<8x4xbf16>
    %45 = vector.extract_strided_slice %9 {offsets = [0, 40], sizes = [8, 4], strides = [1, 1]} : vector<8x96xbf16> to vector<8x4xbf16>
    %46 = vector.extract_strided_slice %9 {offsets = [0, 72], sizes = [8, 4], strides = [1, 1]} : vector<8x96xbf16> to vector<8x4xbf16>
    %cst_17 = arith.constant dense<0.000000e+00> : vector<8x8xf32>
    %47 = tpu.matmul %44, %45, %cst_17 {dimension_numbers = #tpu.dot_dimension_numbers<[1], [1], [0], [0], [0, 0, 1, 0], [], []>} : vector<8x4xbf16>, vector<8x4xbf16>, vector<8x8xf32> -> vector<8x8xf32>
    %cst_18 = arith.constant dense<0xFF800000> : vector<8xf32>
    %48 = vector.multi_reduction <maximumf>, %47, %cst_18 [1] : vector<8x8xf32> to vector<8xf32>
    %49 = vector.shape_cast %48 : vector<8xf32> to vector<8x1xf32>
    %50 = vector.broadcast %49 : vector<8x1xf32> to vector<8x8xf32>
    %51 = arith.subf %47, %50 : vector<8x8xf32>
    %52 = math.exp %51 : vector<8x8xf32>
    %cst_19 = arith.constant dense<0.000000e+00> : vector<8xf32>
    %53 = vector.multi_reduction <add>, %52, %cst_19 [1] : vector<8x8xf32> to vector<8xf32>
    %54 = vector.shape_cast %53 : vector<8xf32> to vector<8x1xf32>
    %55 = tpu.reciprocal %54 {approx = true} : vector<8x1xf32> -> vector<8x1xf32>
    %56 = vector.broadcast %55 : vector<8x1xf32> to vector<8x8xf32>
    %57 = arith.mulf %52, %56 : vector<8x8xf32>
    %58 = arith.truncf %57 : vector<8x8xf32> to vector<8x8xbf16>
    %cst_20 = arith.constant dense<0.000000e+00> : vector<8x4xf32>
    %59 = tpu.matmul %58, %46, %cst_20 {dimension_numbers = #tpu.dot_dimension_numbers<[1], [0], [0], [1], [0, 0, 1, 1], [], []>} : vector<8x8xbf16>, vector<8x4xbf16>, vector<8x4xf32> -> vector<8x4xf32>
    %c0_21 = arith.constant 0 : index
    %c8 = arith.constant 8 : index
    %60 = vector.load %arg7[%c0_21, %c8] : memref<8x32xf32, #tpu.memory_space<vmem>>, vector<8x4xf32>
    tpu.vector_store %arg7[%c0_21, %c8], %59 {strides = array<i32>} : memref<8x32xf32, #tpu.memory_space<vmem>>, vector<8x4xf32>,
    %61 = vector.extract_strided_slice %9 {offsets = [0, 12], sizes = [8, 4], strides = [1, 1]} : vector<8x96xbf16> to vector<8x4xbf16>
    %62 = vector.extract_strided_slice %9 {offsets = [0, 44], sizes = [8, 4], strides = [1, 1]} : vector<8x96xbf16> to vector<8x4xbf16>
    %63 = vector.extract_strided_slice %9 {offsets = [0, 76], sizes = [8, 4], strides = [1, 1]} : vector<8x96xbf16> to vector<8x4xbf16>
    %cst_22 = arith.constant dense<0.000000e+00> : vector<8x8xf32>
    %64 = tpu.matmul %61, %62, %cst_22 {dimension_numbers = #tpu.dot_dimension_numbers<[1], [1], [0], [0], [0, 0, 1, 0], [], []>} : vector<8x4xbf16>, vector<8x4xbf16>, vector<8x8xf32> -> vector<8x8xf32>
    %cst_23 = arith.constant dense<0xFF800000> : vector<8xf32>
    %65 = vector.multi_reduction <maximumf>, %64, %cst_23 [1] : vector<8x8xf32> to vector<8xf32>
    %66 = vector.shape_cast %65 : vector<8xf32> to vector<8x1xf32>
    %67 = vector.broadcast %66 : vector<8x1xf32> to vector<8x8xf32>
    %68 = arith.subf %64, %67 : vector<8x8xf32>
    %69 = math.exp %68 : vector<8x8xf32>
    %cst_24 = arith.constant dense<0.000000e+00> : vector<8xf32>
    %70 = vector.multi_reduction <add>, %69, %cst_24 [1] : vector<8x8xf32> to vector<8xf32>
    %71 = vector.shape_cast %70 : vector<8xf32> to vector<8x1xf32>
    %72 = tpu.reciprocal %71 {approx = true} : vector<8x1xf32> -> vector<8x1xf32>
    %73 = vector.broadcast %72 : vector<8x1xf32> to vector<8x8xf32>
    %74 = arith.mulf %69, %73 : vector<8x8xf32>
    %75 = arith.truncf %74 : vector<8x8xf32> to vector<8x8xbf16>
    %cst_25 = arith.constant dense<0.000000e+00> : vector<8x4xf32>
    %76 = tpu.matmul %75, %63, %cst_25 {dimension_numbers = #tpu.dot_dimension_numbers<[1], [0], [0], [1], [0, 0, 1, 1], [], []>} : vector<8x8xbf16>, vector<8x4xbf16>, vector<8x4xf32> -> vector<8x4xf32>
    %c0_26 = arith.constant 0 : index
    %c12 = arith.constant 12 : index
    %77 = vector.load %arg7[%c0_26, %c12] : memref<8x32xf32, #tpu.memory_space<vmem>>, vector<8x4xf32>
    tpu.vector_store %arg7[%c0_26, %c12], %76 {strides = array<i32>} : memref<8x32xf32, #tpu.memory_space<vmem>>, vector<8x4xf32>,
    %78 = vector.extract_strided_slice %9 {offsets = [0, 16], sizes = [8, 4], strides = [1, 1]} : vector<8x96xbf16> to vector<8x4xbf16>
    %79 = vector.extract_strided_slice %9 {offsets = [0, 48], sizes = [8, 4], strides = [1, 1]} : vector<8x96xbf16> to vector<8x4xbf16>
    %80 = vector.extract_strided_slice %9 {offsets = [0, 80], sizes = [8, 4], strides = [1, 1]} : vector<8x96xbf16> to vector<8x4xbf16>
    %cst_27 = arith.constant dense<0.000000e+00> : vector<8x8xf32>
    %81 = tpu.matmul %78, %79, %cst_27 {dimension_numbers = #tpu.dot_dimension_numbers<[1], [1], [0], [0], [0, 0, 1, 0], [], []>} : vector<8x4xbf16>, vector<8x4xbf16>, vector<8x8xf32> -> vector<8x8xf32>
    %cst_28 = arith.constant dense<0xFF800000> : vector<8xf32>
    %82 = vector.multi_reduction <maximumf>, %81, %cst_28 [1] : vector<8x8xf32> to vector<8xf32>
    %83 = vector.shape_cast %82 : vector<8xf32> to vector<8x1xf32>
    %84 = vector.broadcast %83 : vector<8x1xf32> to vector<8x8xf32>
    %85 = arith.subf %81, %84 : vector<8x8xf32>
    %86 = math.exp %85 : vector<8x8xf32>
    %cst_29 = arith.constant dense<0.000000e+00> : vector<8xf32>
    %87 = vector.multi_reduction <add>, %86, %cst_29 [1] : vector<8x8xf32> to vector<8xf32>
    %88 = vector.shape_cast %87 : vector<8xf32> to vector<8x1xf32>
    %89 = tpu.reciprocal %88 {approx = true} : vector<8x1xf32> -> vector<8x1xf32>
    %90 = vector.broadcast %89 : vector<8x1xf32> to vector<8x8xf32>
    %91 = arith.mulf %86, %90 : vector<8x8xf32>
    %92 = arith.truncf %91 : vector<8x8xf32> to vector<8x8xbf16>
    %cst_30 = arith.constant dense<0.000000e+00> : vector<8x4xf32>
    %93 = tpu.matmul %92, %80, %cst_30 {dimension_numbers = #tpu.dot_dimension_numbers<[1], [0], [0], [1], [0, 0, 1, 1], [], []>} : vector<8x8xbf16>, vector<8x4xbf16>, vector<8x4xf32> -> vector<8x4xf32>
    %c0_31 = arith.constant 0 : index
    %c16 = arith.constant 16 : index
    %94 = vector.load %arg7[%c0_31, %c16] : memref<8x32xf32, #tpu.memory_space<vmem>>, vector<8x4xf32>
    tpu.vector_store %arg7[%c0_31, %c16], %93 {strides = array<i32>} : memref<8x32xf32, #tpu.memory_space<vmem>>, vector<8x4xf32>,
    %95 = vector.extract_strided_slice %9 {offsets = [0, 20], sizes = [8, 4], strides = [1, 1]} : vector<8x96xbf16> to vector<8x4xbf16>
    %96 = vector.extract_strided_slice %9 {offsets = [0, 52], sizes = [8, 4], strides = [1, 1]} : vector<8x96xbf16> to vector<8x4xbf16>
    %97 = vector.extract_strided_slice %9 {offsets = [0, 84], sizes = [8, 4], strides = [1, 1]} : vector<8x96xbf16> to vector<8x4xbf16>
    %cst_32 = arith.constant dense<0.000000e+00> : vector<8x8xf32>
    %98 = tpu.matmul %95, %96, %cst_32 {dimension_numbers = #tpu.dot_dimension_numbers<[1], [1], [0], [0], [0, 0, 1, 0], [], []>} : vector<8x4xbf16>, vector<8x4xbf16>, vector<8x8xf32> -> vector<8x8xf32>
    %cst_33 = arith.constant dense<0xFF800000> : vector<8xf32>
    %99 = vector.multi_reduction <maximumf>, %98, %cst_33 [1] : vector<8x8xf32> to vector<8xf32>
    %100 = vector.shape_cast %99 : vector<8xf32> to vector<8x1xf32>
    %101 = vector.broadcast %100 : vector<8x1xf32> to vector<8x8xf32>
    %102 = arith.subf %98, %101 : vector<8x8xf32>
    %103 = math.exp %102 : vector<8x8xf32>
    %cst_34 = arith.constant dense<0.000000e+00> : vector<8xf32>
    %104 = vector.multi_reduction <add>, %103, %cst_34 [1] : vector<8x8xf32> to vector<8xf32>
    %105 = vector.shape_cast %104 : vector<8xf32> to vector<8x1xf32>
    %106 = tpu.reciprocal %105 {approx = true} : vector<8x1xf32> -> vector<8x1xf32>
    %107 = vector.broadcast %106 : vector<8x1xf32> to vector<8x8xf32>
    %108 = arith.mulf %103, %107 : vector<8x8xf32>
    %109 = arith.truncf %108 : vector<8x8xf32> to vector<8x8xbf16>
    %cst_35 = arith.constant dense<0.000000e+00> : vector<8x4xf32>
    %110 = tpu.matmul %109, %97, %cst_35 {dimension_numbers = #tpu.dot_dimension_numbers<[1], [0], [0], [1], [0, 0, 1, 1], [], []>} : vector<8x8xbf16>, vector<8x4xbf16>, vector<8x4xf32> -> vector<8x4xf32>
    %c0_36 = arith.constant 0 : index
    %c20 = arith.constant 20 : index
    %111 = vector.load %arg7[%c0_36, %c20] : memref<8x32xf32, #tpu.memory_space<vmem>>, vector<8x4xf32>
    tpu.vector_store %arg7[%c0_36, %c20], %110 {strides = array<i32>} : memref<8x32xf32, #tpu.memory_space<vmem>>, vector<8x4xf32>,
    %112 = vector.extract_strided_slice %9 {offsets = [0, 24], sizes = [8, 4], strides = [1, 1]} : vector<8x96xbf16> to vector<8x4xbf16>
    %113 = vector.extract_strided_slice %9 {offsets = [0, 56], sizes = [8, 4], strides = [1, 1]} : vector<8x96xbf16> to vector<8x4xbf16>
    %114 = vector.extract_strided_slice %9 {offsets = [0, 88], sizes = [8, 4], strides = [1, 1]} : vector<8x96xbf16> to vector<8x4xbf16>
    %cst_37 = arith.constant dense<0.000000e+00> : vector<8x8xf32>
    %115 = tpu.matmul %112, %113, %cst_37 {dimension_numbers = #tpu.dot_dimension_numbers<[1], [1], [0], [0], [0, 0, 1, 0], [], []>} : vector<8x4xbf16>, vector<8x4xbf16>, vector<8x8xf32> -> vector<8x8xf32>
    %cst_38 = arith.constant dense<0xFF800000> : vector<8xf32>
    %116 = vector.multi_reduction <maximumf>, %115, %cst_38 [1] : vector<8x8xf32> to vector<8xf32>
    %117 = vector.shape_cast %116 : vector<8xf32> to vector<8x1xf32>
    %118 = vector.broadcast %117 : vector<8x1xf32> to vector<8x8xf32>
    %119 = arith.subf %115, %118 : vector<8x8xf32>
    %120 = math.exp %119 : vector<8x8xf32>
    %cst_39 = arith.constant dense<0.000000e+00> : vector<8xf32>
    %121 = vector.multi_reduction <add>, %120, %cst_39 [1] : vector<8x8xf32> to vector<8xf32>
    %122 = vector.shape_cast %121 : vector<8xf32> to vector<8x1xf32>
    %123 = tpu.reciprocal %122 {approx = true} : vector<8x1xf32> -> vector<8x1xf32>
    %124 = vector.broadcast %123 : vector<8x1xf32> to vector<8x8xf32>
    %125 = arith.mulf %120, %124 : vector<8x8xf32>
    %126 = arith.truncf %125 : vector<8x8xf32> to vector<8x8xbf16>
    %cst_40 = arith.constant dense<0.000000e+00> : vector<8x4xf32>
    %127 = tpu.matmul %126, %114, %cst_40 {dimension_numbers = #tpu.dot_dimension_numbers<[1], [0], [0], [1], [0, 0, 1, 1], [], []>} : vector<8x8xbf16>, vector<8x4xbf16>, vector<8x4xf32> -> vector<8x4xf32>
    %c0_41 = arith.constant 0 : index
    %c24 = arith.constant 24 : index
    %128 = vector.load %arg7[%c0_41, %c24] : memref<8x32xf32, #tpu.memory_space<vmem>>, vector<8x4xf32>
    tpu.vector_store %arg7[%c0_41, %c24], %127 {strides = array<i32>} : memref<8x32xf32, #tpu.memory_space<vmem>>, vector<8x4xf32>,
    %129 = vector.extract_strided_slice %9 {offsets = [0, 28], sizes = [8, 4], strides = [1, 1]} : vector<8x96xbf16> to vector<8x4xbf16>
    %130 = vector.extract_strided_slice %9 {offsets = [0, 60], sizes = [8, 4], strides = [1, 1]} : vector<8x96xbf16> to vector<8x4xbf16>
    %131 = vector.extract_strided_slice %9 {offsets = [0, 92], sizes = [8, 4], strides = [1, 1]} : vector<8x96xbf16> to vector<8x4xbf16>
    %cst_42 = arith.constant dense<0.000000e+00> : vector<8x8xf32>
    %132 = tpu.matmul %129, %130, %cst_42 {dimension_numbers = #tpu.dot_dimension_numbers<[1], [1], [0], [0], [0, 0, 1, 0], [], []>} : vector<8x4xbf16>, vector<8x4xbf16>, vector<8x8xf32> -> vector<8x8xf32>
    %cst_43 = arith.constant dense<0xFF800000> : vector<8xf32>
    %133 = vector.multi_reduction <maximumf>, %132, %cst_43 [1] : vector<8x8xf32> to vector<8xf32>
    %134 = vector.shape_cast %133 : vector<8xf32> to vector<8x1xf32>
    %135 = vector.broadcast %134 : vector<8x1xf32> to vector<8x8xf32>
    %136 = arith.subf %132, %135 : vector<8x8xf32>
    %137 = math.exp %136 : vector<8x8xf32>
    %cst_44 = arith.constant dense<0.000000e+00> : vector<8xf32>
    %138 = vector.multi_reduction <add>, %137, %cst_44 [1] : vector<8x8xf32> to vector<8xf32>
    %139 = vector.shape_cast %138 : vector<8xf32> to vector<8x1xf32>
    %140 = tpu.reciprocal %139 {approx = true} : vector<8x1xf32> -> vector<8x1xf32>
    %141 = vector.broadcast %140 : vector<8x1xf32> to vector<8x8xf32>
    %142 = arith.mulf %137, %141 : vector<8x8xf32>
    %143 = arith.truncf %142 : vector<8x8xf32> to vector<8x8xbf16>
    %cst_45 = arith.constant dense<0.000000e+00> : vector<8x4xf32>
    %144 = tpu.matmul %143, %131, %cst_45 {dimension_numbers = #tpu.dot_dimension_numbers<[1], [0], [0], [1], [0, 0, 1, 1], [], []>} : vector<8x8xbf16>, vector<8x4xbf16>, vector<8x4xf32> -> vector<8x4xf32>
    %c0_46 = arith.constant 0 : index
    %c28 = arith.constant 28 : index
    %145 = vector.load %arg7[%c0_46, %c28] : memref<8x32xf32, #tpu.memory_space<vmem>>, vector<8x4xf32>
    tpu.vector_store %arg7[%c0_46, %c28], %144 {strides = array<i32>} : memref<8x32xf32, #tpu.memory_space<vmem>>, vector<8x4xf32>,
    %c0_47 = arith.constant 0 : index
    %c0_48 = arith.constant 0 : index
    %146 = vector.load %arg7[%c0_47, %c0_48] : memref<8x32xf32, #tpu.memory_space<vmem>>, vector<8x32xf32>
    %147 = arith.truncf %146 : vector<8x32xf32> to vector<8x32xbf16>
    %c0_49 = arith.constant 0 : index
    %c0_50 = arith.constant 0 : index
    %148 = vector.load %arg4[%c0_49, %c0_50] : memref<32x32xbf16, #tpu.memory_space<vmem>>, vector<32x32xbf16>
    %cst_51 = arith.constant dense<0.000000e+00> : vector<8x32xf32>
    %149 = tpu.matmul %147, %148, %cst_51 {dimension_numbers = #tpu.dot_dimension_numbers<[1], [0], [0], [1], [0, 0, 1, 1], [], []>} : vector<8x32xbf16>, vector<32x32xbf16>, vector<8x32xf32> -> vector<8x32xf32>
    %c0_52 = arith.constant 0 : index
    %c0_53 = arith.constant 0 : index
    %150 = vector.load %arg5[%c0_52, %c0_53] : memref<1x32xf32, #tpu.memory_space<vmem>>, vector<1x32xf32>
    %151 = vector.shape_cast %150 : vector<1x32xf32> to vector<32xf32>
    %152 = vector.shape_cast %151 : vector<32xf32> to vector<1x32xf32>
    %153 = vector.broadcast %152 : vector<1x32xf32> to vector<8x32xf32>
    %154 = arith.addf %149, %153 : vector<8x32xf32>
    %c0_54 = arith.constant 0 : index
    %c0_55 = arith.constant 0 : index
    %c0_56 = arith.constant 0 : index
    %155 = vector.load %arg6[%c0_54, %c0_55, %c0_56] : memref<1x8x32xf32, #tpu.memory_space<vmem>>, vector<1x8x32xf32>
    %156 = vector.shape_cast %155 : vector<1x8x32xf32> to vector<8x32xf32>
    %157 = vector.shape_cast %154 : vector<8x32xf32> to vector<1x8x32xf32>
    tpu.vector_store %arg6[%c0_54, %c0_55, %c0_56], %157 {strides = array<i32>} : memref<1x8x32xf32, #tpu.memory_space<vmem>>, vector<1x8x32xf32>,
    return
  }
  func.func @transform_0(%arg0: i32) -> (i32, i32, i32) {
    %c0_i32 = arith.constant 0 : i32
    %c0_i32_0 = arith.constant 0 : i32
    %c0_i32_1 = arith.constant 0 : i32
    return %arg0, %c0_i32, %c0_i32_0 : i32, i32, i32
  }
  func.func @transform_1(%arg0: i32) -> (i32, i32) {
    %c0_i32 = arith.constant 0 : i32
    %c0_i32_0 = arith.constant 0 : i32
    %c0_i32_1 = arith.constant 0 : i32
    return %c0_i32, %c0_i32_0 : i32, i32
  }
  func.func @transform_2(%arg0: i32) -> (i32, i32) {
    %c0_i32 = arith.constant 0 : i32
    %c0_i32_0 = arith.constant 0 : i32
    %c0_i32_1 = arith.constant 0 : i32
    return %c0_i32, %c0_i32_0 : i32, i32
  }
  func.func @transform_3(%arg0: i32) -> (i32, i32) {
    %c0_i32 = arith.constant 0 : i32
    %c0_i32_0 = arith.constant 0 : i32
    %c0_i32_1 = arith.constant 0 : i32
    return %c0_i32, %c0_i32_0 : i32, i32
  }
  func.func @transform_4(%arg0: i32) -> (i32, i32) {
    %c0_i32 = arith.constant 0 : i32
    %c0_i32_0 = arith.constant 0 : i32
    %c0_i32_1 = arith.constant 0 : i32
    return %c0_i32, %c0_i32_0 : i32, i32
  }
  func.func @transform_5(%arg0: i32) -> (i32, i32, i32) {
    %c0_i32 = arith.constant 0 : i32
    %c0_i32_0 = arith.constant 0 : i32
    %c0_i32_1 = arith.constant 0 : i32
    return %arg0, %c0_i32, %c0_i32_0 : i32, i32, i32
  }
}

</mosaic_0001>

<bundles_post_ra>
// kernel: tpu_custom_call.1
= control target key start
LH: loop header
LB: loop body
LE: loop exit
PB: predicated region body
PF: predicated region fallthrough
CT: control target
= control target key end

     0   :  { %10 = vsyncpa [#allocation4], 0  ;;  %s1624_s0 = inlined_call_operand.hbm [shape: bf16[2,8,32], index: 0, kind: input, shape index: {}]   ;;  %s1625_s1 = inlined_call_operand.hbm [shape: bf16[32,96], index: 1, kind: input, shape index: {}]   ;;  %s1626_s2 = inlined_call_operand.vmem [shape: f32[1,96], index: 2, kind: input, shape index: {}]   ;;  %s1627_s3 = inlined_call_operand.hbm [shape: bf16[32,32], index: 3, kind: input, shape index: {}]   ;;  %s1628_s4 = inlined_call_operand.vmem [shape: f32[1,32], index: 4, kind: input, shape index: {}]   ;;  %s1629_s5 = inlined_call_operand.hbm [shape: f32[2,8,32], index: 5, kind: output, shape index: {}]  }
   0x1   :  { %12 = vsyncpa [#allocation4 + $0x1], 0 }
   0x2   :  { %13 = vsyncpa [#allocation7], 0 }
   0x3   :  { %14 = vsyncpa [#allocation5], 0 }
   0x4   :  { %16 = vsyncpa [#allocation5 + $0x1], 0  ;;  %s1367_s18 = smov 0   ;;  %s1369_s19 = smov 0  }
   0x5   :  { %s1371_s20 = smov 0   ;;  %s1373_s21 = smov 0  }
   0x6 LB: > { %s174_s24 = sshll.u32 %s1625_s1, 4  ;;  %s1391_s25 = sadd.s32 4294967295, %s1301_s21   ;;  %s1301_s21 = sphi %s1373_s21, %s1640_s21   ;;  %s1297_s20 = sphi %s1371_s20, %s1639_s20   ;;  %s1293_s19 = sphi %s1369_s19, %s1638_s19   ;;  %s1289_s18 = sphi %s1367_s18, %s1637_s18   ;;  %s175_s24 = int_to_ptr.hbm [resolvable:$true] %s174_s24 }
   0x7   : > { %p955_p0 = scmp.ge.s32.totalorder %s1301_s21, 1  ;;  %p43_p1 = scmp.eq.s32.totalorder %s1391_s25, 0 }
   0x8   : > { %p163_p2 = scmp.lt.s32.totalorder %s1301_s21, 3  ;;  %s1303_s27 = smov [#allocation6]  }
   0x9   : > { %s176_s28 = sshll.u32 %s1303_s27, 4  ;;  %s191_s6 = sshll.u32 %s1627_s3, 4  ;;  %s177_s28 = int_to_ptr.vmem [resolvable:$true] %s176_s28  ;;  %s192_s6 = int_to_ptr.hbm [resolvable:$true] %s191_s6 }
   0xa   : > { %p1396_p3 = pnand %p955_p0, %p163_p2  ;;  %s1304_s7 = smov [#allocation8]  }
   0xb   : > { %s193_s8 = sshll.u32 %s1304_s7, 4  ;;  %s1305_s9 = smov 64   ;;  %s194_s8 = int_to_ptr.vmem [resolvable:$true] %s193_s8 }
   0xc   : > { %p1020_p4 = pneg %p1396_p3  ;;  %s1306_s10 = smov 4  }
   0xd   : > { %s954_s11 = sadd.s32 4294967294, %s1301_s21   ;;  %s1410_s12 = sadd.s32 1, %s1301_s21  }
   0xe   : > { %p1021_p6 = pnand %p1020_p4, %p43_p1  ;;  %s26_s13 = ssub.s32 %s1301_s21, %s1410_s12 }
   0xf   : > { %s29_s14 = sadd.s32 1, %s1297_s20  ;;  %p27_p7 = scmp.eq.s32.totalorder %s26_s13, 0 }
  0x10   : > { %1023 = dma.hbm_to_vmem [thread:$0]  (!%p1021_p6), %s175_s24, 256, %s177_s28, [#allocation7], %s1305_s9, %s1305_s9, %s1306_s10  }
  0x11   : > { %1026 = dma.hbm_to_vmem [thread:$0]  (!%p1021_p6), %s192_s6, 256, %s194_s8, [#allocation7], %s1305_s9, %s1305_s9, %s1306_s10  }
  0x12   : > { %p36_p8 = scmp.ne.s32.totalorder %s1297_s20, %s1293_s19  ;;  %p37_p9 = scmp.eq.s32.totalorder %s1301_s21, 0 }
  0x13   : > { %p42_p10 = scmp.ne.s32.totalorder %s1293_s19, %s1289_s18  ;;  %p150_p13 = scmp.eq.s32.totalorder %s1391_s25, 1 }
  0x14   : > { %s1421_s15 = scalar_select %p27_p7, %s1297_s20, %s29_s14  }
  0x15   : > { %p1423_p11 = por %p37_p9, %p36_p8  ;;  %p1429_p12 = por %p43_p1, %p42_p10 }
  0x16   : > { %p156_p0 = scmp.eq.s32.totalorder %s954_s11, 1  ;;  %p1037_p2 = scmp.lt.s32.totalorder %s1301_s21, 2 }
  0x17   : > { %s210_s22 = sand.u32 1, %s1297_s20   ;;  %p1436_p4 = por %p150_p13, %p36_p8 }
  0x18   : > { %p1440_p6 = por %p156_p0, %p42_p10  ;;  %s959_s27 = sshll.u32 %s210_s22, 2 }
  0x19   : > { %s960_s28 = sshll.u32 %s1301_s21, 2  ;;  %s214_s7 = scalar_lea.vmem [#allocation3], %s959_s27 }
  0x1a   : > { %s218_s6 = scalar_lea.hbm %s1624_s0, %s960_s28  ;;  %s222_s8 = sshll.u32 %s214_s7, 4  ;;  %s223_s8 = int_to_ptr.vmem [resolvable:$true] %s222_s8 }
  0x1b   : > { %s220_s9 = sshll.u32 %s218_s6, 4  ;;  %p1450_p7 = pnand %p1037_p2, %p1423_p11  ;;  %s221_s9 = int_to_ptr.hbm [resolvable:$true] %s220_s9 }
  0x1c   : > { %s211_s11 = scalar_lea.sflag [#allocation4], %s210_s22  ;;  %s1201_s13 = sshra.s32 %s221_s9, 4  ;;  %s1202_s13 = int_to_ptr.hbm [resolvable:$true] %s1201_s13 }
  0x1d   : > { %s1203_s14 = scalar_lea.hbm %s1202_s13, 4  ;;  %p1205_p9 = pneg %p1450_p7 }
  0x1e   : > { %p1204_p8 = scmp.ne.s32.totalorder %s1202_s13, %s1203_s14  ;;  %s1208_s29 = scalar_lea.hbm %s1624_s0, 8 }
  0x1f   : > { %p1209_p11 = scmp.lt.s32.totalorder %s1202_s13, %s1624_s0  ;;  %p1210_p0 = scmp.lt.s32.totalorder %s1208_s29, %s1203_s14 }
  0x20   : > { %p1206_p10 = pnand %p1205_p9, %p1204_p8 }
  0x21   : > { %p1211_p2 = por %p1210_p0, %p1209_p11 }
  0x22   : > { %p1207_p13 = pneg %p1206_p10 }
  0x24   : > { %p1212_p5 = pnand %p1211_p2, %p1207_p13 }
  0x26   : > { %1215 = shalt.err (!%p1212_p5)
}
  0x27   : > { %1030 = dma.hbm_to_vmem [thread:$0]  (!%p1450_p7), %s221_s9, 64, %s223_s8, %s211_s11  }
  0x28   : > { %231 = sbr.rel (%p1396_p3) target bundleno = 1180 (0x49c), region = 40  ;;  %s1467_s22 = sand.u32 (!%p1396_p3), 1, %s1293_s19  }
  0x29   : > { %s962_s6 = sshll.u32 (!%p1396_p3), %s1467_s22, 2  ;;  %s234_s7 = scalar_lea.sflag (!%p1396_p3), [#allocation4], %s1467_s22 }
  0x2a   : > { %s237_s27 = scalar_lea.vmem (!%p1396_p3), [#allocation3], %s962_s6 }
  0x2d   : > { %1276 = dma.done.wait (%p1429_p12), %s234_s7, 64  }
  0x2e   : > { %1278 = vsyncadd (%p1429_p12), %s234_s7, 4294967232 }
  0x2f   : > { %1280 = dma.done.wait (%p43_p1), [#allocation7], 512  }
  0x30   : > { %1282 = vsyncadd (%p43_p1), [#allocation7], 4294966784  ;;  %v1005_v0 = vld [vmem:[#allocation6 + $0x8] sm:$0xff]  ;;  %v1004_v1 = vld [vmem:[#allocation6] sm:$0xff]  ;;  %vm297_vm0 = vcmask 261120   ;;  %s1307_s17 = smov 116  }
  0x31   : > { %307 = vmatpush.bf16.msra.mxu0 %v1005_v0  ;;  %v276_v2 = vld [vmem:[%s237_s27] sm:$0xf]  ;;  %v1107_v3 = vld [vmem:[%s1626_s2] ss:$0 sm:$0xff]  ;;  %s1308_s9 = smov 124   ;;  %s1309_s10 = smov 96  }
  0x32   : > { %s1310_s11 = smov 88   ;;  %s1311_s13 = smov 84   ;;  %vm320_vm1 = vcmask 31744   ;;  %vm340_vm2 = vcmask 64512   ;;  %vm358_vm3 = vcmask 1043456   ;;  %vm436_vm4 = vcmask 64544  }
  0x33   : > { %s1312_s14 = smov 92   ;;  %s1313_s28 = smov 108   ;;  %vm498_vm5 = vcmask 97344   ;;  %vm560_vm6 = vcmask 130144   ;;  %vm622_vm7 = vcmask 162944   ;;  %vm684_vm8 = vcmask 195744  }
  0x34   : > { %s1314_s29 = smov 120   ;;  %s1315_s30 = smov 76   ;;  %vm746_vm9 = vcmask 228544   ;;  %vm808_vm10 = vcmask 261344  }
  0x35   : > { %308 = vmatpush.bf16.msra.mxu0 %v1004_v1  ;;  %s1316_s16 = smov 112   ;;  %s1317_s6 = smov 68  }
  0x36   : > { %s1318_s7 = smov 80   ;;  %s1319_s27 = smov 104  }
  0x37   : > { %s1320_s26 = smov 72   ;;  %s1321_s8 = smov 100  }
  0x38   : > { %974 = vmatmul.msk.bf16.vlgmr.msra.gmra.mxu0 %vm297_vm0, %v276_v2 }
  0xb5   : > { %v310_v4 = vpop.f32.mrf.mxu0 }
  0xb6   : > { %v311_v5 = vadd.f32 %v1107_v3, %v310_v4 }
  0xb8   : > { %v314_v6 = vpack.c.bf16 %v311_v5, %v311_v5 }
  0xba   : > { %v316_v7 = vunpack.c.l.b16 %v314_v6 }
  0xbc   : > { %v1483_v8 = vpack.c.b16 %v316_v7, %v316_v7 }
  0xbd   : > { %v312_v9 = vpop.f32.mrf.mxu0 }
  0xbe   : > { %500 = vrot.lane.b32.xlu2 %v1483_v8, %s1307_s17  ;;  %376 = vrot.lane.b32.xlu1 %v1483_v8, %s1308_s9  ;;  %s1322_s17 = smov 60   ;;  %s1323_s9 = smov 64  }
  0xbf   : > { %318 = vrot.lane.b32.xlu0 %v1483_v8, %s1309_s10  ;;  %s1324_s10 = smov 52  }
  0xc6   : > { %440 = vrot.lane.b32.xlu2 %v1483_v8, %s1310_s11  ;;  %502 = vrot.lane.b32.xlu1 %v1483_v8, %s1311_s13  ;;  %s1325_s11 = smov 44   ;;  %s1326_s13 = smov 48  }
  0xc7   : > { %378 = vrot.lane.b32.xlu0 %v1483_v8, %s1312_s14  ;;  %s1327_s14 = smov 56  }
  0xce   : > { %624 = vrot.lane.b32.xlu2 %v1483_v8, %s1313_s28  ;;  %438 = vrot.lane.b32.xlu1 %v1483_v8, %s1314_s29  ;;  %s1328_s28 = smov 36   ;;  %s1329_s29 = smov 40  }
  0xcf   : > { %626 = vrot.lane.b32.xlu0 %v1483_v8, %s1315_s30  ;;  %s1330_s30 = smov 8  }
  0xd6   : > { %562 = vrot.lane.b32.xlu2 %v1483_v8, %s1316_s16  ;;  %750 = vrot.lane.b32.xlu1 %v1483_v8, %s1317_s6  ;;  %s1331_s16 = smov 4   ;;  %s1332_s6 = smov 16  }
  0xd7   : > { %564 = vrot.lane.b32.xlu0 %v1483_v8, %s1318_s7  ;;  %s1333_s7 = smov 12  }
  0xde   : > { %686 = vrot.lane.b32.xlu2 %v1483_v8, %s1319_s27  ;;  %688 = vrot.lane.b32.xlu1 %v1483_v8, %s1320_s26  ;;  %s1334_s27 = smov 24   ;;  %s1335_s26 = smov 20  }
  0xdf   : > { %748 = vrot.lane.b32.xlu0 %v1483_v8, %s1321_s8  ;;  %s1336_s8 = smov 28  }
  0xe6   : > { %411 = vrot.lane.b32.xlu2 %v1483_v8, %s1322_s17  ;;  %s1001_s17 = sshll.u32 %s1391_s25, 3  ;;  %s850_s25 = scalar_lea.sflag [#allocation5], %s1467_s22 }
 0x118   : > { %v501_v10 = vpop.permute.xlu2 %500 }
 0x120   : > { %v441_v11 = vpop.permute.xlu2 %440 }
 0x121   : > { %v446_v12 = vsel %vm320_vm1, %v441_v11, 0 }
 0x122   : > { %455 = vmatpush.bf16.xpose.msrb.mxu0 %v446_v12 }
 0x128   : > { %v625_v23 = vpop.permute.xlu2 %624 }
 0x130   : > { %v377_v13 = vpop.permute.xlu1 %376  ;;  %v563_v28 = vpop.permute.xlu2 %562 }
 0x131   : > { %v319_v14 = vpop.permute.xlu0 %318 }
 0x132   : > { %v325_v15 = vsel %vm320_vm1, %v319_v14, 0 }
 0x133   : > { %334 = vmatpush.bf16.xpose.msra.mxu1 %v325_v15 }
 0x138   : > { %v503_v16 = vpop.permute.xlu1 %502  ;;  %v687_v31 = vpop.permute.xlu2 %686 }
 0x139   : > { %v379_v17 = vpop.permute.xlu0 %378  ;;  %v508_v18 = vsel %vm320_vm1, %v503_v16, 0 }
 0x13a   : > { %975 = vmatmul.msk.bf16.vlgmr.msra.gmra.mxu1 %vm320_vm1, %v314_v6  ;;  %v384_v19 = vsel %vm320_vm1, %v379_v17, 0 }
 0x13b   : > { %393 = vmatpush.bf16.xpose.msra.mxu3 %v384_v19 }
 0x140   : > { %v439_v20 = vpop.permute.xlu1 %438  ;;  %v412_v57 = vpop.permute.xlu2 %411 }
 0x141   : > { %v627_v21 = vpop.permute.xlu0 %626  ;;  %979 = vmatmul.msk.bf16.vlgmr.msrb.gmra.mxu0 %vm320_vm1, %v439_v20 }
 0x142   : > { %v632_v22 = vsel %vm320_vm1, %v627_v21, 0  ;;  %977 = vmatmul.msk.bf16.vlgmr.msra.gmra.mxu3 %vm320_vm1, %v377_v13 }
 0x143   : > { %517 = vmatpush.bf16.xpose.msrb.mxu3 %v508_v18 }
 0x148   : > { %v751_v24 = vpop.permute.xlu1 %750 }
 0x149   : > { %v565_v25 = vpop.permute.xlu0 %564  ;;  %v756_v30 = vsel %vm320_vm1, %v751_v24, 0 }
 0x14a   : > { %v570_v26 = vsel %vm320_vm1, %v565_v25, 0 }
 0x14b   : > { %641 = vmatpush.bf16.xpose.msra.mxu3 %v632_v22  ;;  %579 = vmatpush.bf16.xpose.msra.mxu0 %v570_v26 }
 0x150   : > { %v689_v27 = vpop.permute.xlu1 %688 }
 0x151   : > { %v694_v29 = vsel %vm320_vm1, %v689_v27, 0  ;;  %v749_v32 = vpop.permute.xlu0 %748 }
 0x152   : > { %981 = vmatmul.msk.bf16.vlgmr.msrb.gmra.mxu3 %vm320_vm1, %v501_v10  ;;  %983 = vmatmul.msk.bf16.vlgmr.msra.gmra.mxu0 %vm320_vm1, %v563_v28  ;;  %v417_v10 = vsel %vm358_vm3, %v412_v57, 0 }
 0x153   : > { %765 = vmatpush.bf16.xpose.msrb.mxu3 %v756_v30  ;;  %703 = vmatpush.bf16.xpose.msrb.mxu0 %v694_v29 }
 0x162   : > { %985 = vmatmul.msk.bf16.vlgmr.msra.gmra.mxu3 %vm320_vm1, %v625_v23  ;;  %987 = vmatmul.msk.bf16.vlgmr.msrb.gmra.mxu0 %vm320_vm1, %v687_v31 }
 0x172   : > { %989 = vmatmul.msk.bf16.vlgmr.msrb.gmra.mxu3 %vm320_vm1, %v749_v32 }
 0x1b7   : > { %v336_v33 = vpop.f32.mrf.mxu1 }
 0x1b8   : > { %v341_v34 = vsel %vm340_vm2, %v336_v33, -inf }
 0x1b9   : > { %342 = vmax.xlane.f32.xlu0 %v341_v34 }
 0x1be   : > { %v457_v35 = vpop.f32.mrf.mxu0 }
 0x1bf   : > { %v338_v36 = vpop.f32.mrf.mxu1  ;;  %v461_v37 = vsel %vm340_vm2, %v457_v35, -inf }
 0x1c0   : > { %462 = vmax.xlane.f32.xlu2 %v461_v37 }
 0x1c5   : > { %v395_v38 = vpop.f32.mrf.mxu3 }
 0x1c6   : > { %v459_v39 = vpop.f32.mrf.mxu0  ;;  %v399_v40 = vsel %vm340_vm2, %v395_v38, -inf }
 0x1c7   : > { %400 = vmax.xlane.f32.xlu1 %v399_v40 }
 0x1cd   : > { %353 = vrot.lane.b32.xlu0 %v1483_v8, %s1323_s9  ;;  %v397_v41 = vpop.f32.mrf.mxu3  ;;  %s965_s9 = sshll.u32 %s1467_s22, 3 }
 0x1cf   : > { %v581_v42 = vpop.f32.mrf.mxu0 }
 0x1d0   : > { %v585_v43 = vsel %vm340_vm2, %v581_v42, -inf }
 0x1d1   : > { %586 = vmax.xlane.f32.xlu2 %v585_v43 }
 0x1d5   : > { %v519_v44 = vpop.f32.mrf.mxu3 }
 0x1d6   : > { %v523_v46 = vsel %vm340_vm2, %v519_v44, -inf }
 0x1d7   : > { %v583_v45 = vpop.f32.mrf.mxu0 }
 0x1d9   : > { %524 = vmax.xlane.f32.xlu2 %v523_v46 }
 0x1dd   : > { %v521_v47 = vpop.f32.mrf.mxu3 }
 0x1df   : > { %v705_v48 = vpop.f32.mrf.mxu0 }
 0x1e0   : > { %v709_v49 = vsel %vm340_vm2, %v705_v48, -inf }
 0x1e1   : > { %710 = vmax.xlane.f32.xlu1 %v709_v49 }
 0x1e5   : > { %v643_v50 = vpop.f32.mrf.mxu3 }
 0x1e6   : > { %v647_v54 = vsel %vm340_vm2, %v643_v50, -inf }
 0x1e7   : > { %v707_v51 = vpop.f32.mrf.mxu0 }
 0x1ed   : > { %v645_v52 = vpop.f32.mrf.mxu3 }
 0x1f5   : > { %v1524_v53 = vpop.f32.mrf.mxu3 }
 0x1f6   : > { %v771_v55 = vsel %vm340_vm2, %v1524_v53, -inf }
 0x1f7   : > { %648 = vmax.xlane.f32.xlu0 %v647_v54  ;;  %772 = vmax.xlane.f32.xlu1 %v771_v55 }
 0x1fd   : > { %v769_v56 = vpop.f32.mrf.mxu3 }
 0x22c   : > { %v343_v58 = vpop.xlane.xlu0 %342 }
 0x22d   : > { %v344_v59 = vsub.f32 %v336_v33, %v343_v58 }
 0x22f   : > { %v345_v60 = vmul.f32 1.442695, %v344_v59 }
 0x231   : > { %1109 = vpow2.f32 %v345_v60 }
 0x233   : > { %v463_v61 = vpop.xlane.xlu2 %462 }
 0x234   : > { %v464_v62 = vsub.f32 %v457_v35, %v463_v61 }
 0x236   : > { %v465_v63 = vmul.f32 1.442695, %v464_v62 }
 0x237   : > { %v1529_v0 = vpop.eup %1109 }
 0x238   : > { %1111 = vpow2.f32 %v465_v63  ;;  %v347_v1 = vsel %vm340_vm2, %v1529_v0, 0.0 }
 0x239   : > { %348 = vadd.xlane.f32.xlu1 %v347_v1 }
 0x23a   : > { %v401_v2 = vpop.xlane.xlu1 %400 }
 0x23b   : > { %v402_v3 = vsub.f32 %v395_v38, %v401_v2 }
 0x23d   : > { %v403_v4 = vmul.f32 1.442695, %v402_v3 }
 0x23e   : > { %v1533_v5 = vpop.eup %1111 }
 0x23f   : > { %1113 = vpow2.f32 %v403_v4  ;;  %v354_v6 = vpop.permute.xlu0 %353  ;;  %v467_v7 = vsel %vm340_vm2, %v1533_v5, 0.0 }
 0x240   : > { %468 = vadd.xlane.f32.xlu0 %v467_v7  ;;  %v360_v9 = vsel %vm358_vm3, %v354_v6, 0 }
 0x241   : > { %369 = vmatpush.bf16.msra.mxu2 %v360_v9 }
 0x244   : > { %v587_v13 = vpop.xlane.xlu2 %586 }
 0x245   : > { %426 = vmatpush.bf16.msrb.mxu2 %v417_v10  ;;  %v1539_v11 = vpop.eup %1113  ;;  %v588_v14 = vsub.f32 %v581_v42, %v587_v13 }
 0x246   : > { %v405_v12 = vsel %vm340_vm2, %v1539_v11, 0.0 }
 0x247   : > { %406 = vadd.xlane.f32.xlu2 %v405_v12  ;;  %v589_v15 = vmul.f32 1.442695, %v588_v14 }
 0x249   : > { %1115 = vpow2.f32 %v589_v15 }
 0x24c   : > { %v525_v16 = vpop.xlane.xlu2 %524 }
 0x24d   : > { %v526_v18 = vsub.f32 %v519_v44, %v525_v16 }
 0x24f   : > { %v527_v21 = vmul.f32 1.442695, %v526_v18  ;;  %v1116_v23 = vpop.eup %1115 }
 0x250   : > { %v591_v27 = vsel %vm340_vm2, %v1116_v23, 0.0 }
 0x251   : > { %1117 = vpow2.f32 %v527_v21 }
 0x252   : > { %535 = vrot.lane.b32.xlu1 %v1483_v8, %s1324_s10 }
 0x254   : > { %659 = vrot.lane.b32.xlu0 %v1483_v8, %s1325_s11  ;;  %v711_v17 = vpop.xlane.xlu1 %710 }
 0x255   : > { %v712_v20 = vsub.f32 %v705_v48, %v711_v17 }
 0x257   : > { %v713_v24 = vmul.f32 1.442695, %v712_v20  ;;  %v1118_v29 = vpop.eup %1117 }
 0x258   : > { %v529_v32 = vsel %vm340_vm2, %v1118_v29, 0.0 }
 0x259   : > { %1119 = vpow2.f32 %v713_v24 }
 0x25c   : > { %597 = vrot.lane.b32.xlu0 %v1483_v8, %s1326_s13  ;;  %s860_s13 = scalar_lea.hbm %s1629_s5, %s1001_s17 }
 0x25f   : > { %473 = vrot.lane.b32.xlu2 %v1483_v8, %s1327_s14  ;;  %v1549_v30 = vpop.eup %1119 }
 0x260   : > { %v715_v34 = vsel %vm340_vm2, %v1549_v30, 0.0 }
 0x26a   : > { %v649_v19 = vpop.xlane.xlu0 %648  ;;  %v773_v26 = vpop.xlane.xlu1 %772 }
 0x26b   : > { %v650_v22 = vsub.f32 %v643_v50, %v649_v19  ;;  %v774_v28 = vsub.f32 %v1524_v53, %v773_v26 }
 0x26d   : > { %v651_v25 = vmul.f32 1.442695, %v650_v22  ;;  %v775_v31 = vmul.f32 1.442695, %v774_v28 }
 0x26f   : > { %1121 = vpow2.f32 %v651_v25 }
 0x270   : > { %1123 = vpow2.f32 %v775_v31 }
 0x275   : > { %v1552_v33 = vpop.eup %1121 }
 0x276   : > { %v653_v35 = vsel %vm340_vm2, %v1552_v33, 0.0  ;;  %v1558_v36 = vpop.eup %1123 }
 0x277   : > { %v777_v37 = vsel %vm340_vm2, %v1558_v36, 0.0 }
 0x27c   : > { %592 = vadd.xlane.f32.xlu1 %v591_v27 }
 0x284   : > { %530 = vadd.xlane.f32.xlu1 %v529_v32 }
 0x286   : > { %716 = vadd.xlane.f32.xlu0 %v715_v34 }
 0x288   : > { %654 = vadd.xlane.f32.xlu2 %v653_v35 }
 0x290   : > { %778 = vadd.xlane.f32.xlu2 %v777_v37  ;;  %v1006_v37 = vld [vmem:[#allocation8] sm:$0xff] }
 0x29d   : > { %783 = vrot.lane.b32.xlu1 %v1483_v8, %s1328_s28 }
 0x2a8   : > { %721 = vrot.lane.b32.xlu2 %v1483_v8, %s1329_s29  ;;  %s274_s29 = scalar_lea.vmem [#allocation9], %s965_s9 }
 0x2ac   : > { %v349_v38 = vpop.xlane.xlu1 %348 }
 0x2ad   : > { %1125 = vrcp.f32 %v349_v38 }
 0x2b3   : > { %v1126_v39 = vpop.eup %1125  ;;  %v469_v41 = vpop.xlane.xlu0 %468 }
 0x2b4   : > { %v351_v40 = vmul.f32 %v1126_v39, %v1529_v0  ;;  %1127 = vrcp.f32 %v469_v41 }
 0x2b6   : > { %v352_v42 = vpack.c.bf16 %v351_v40, %v351_v40 }
 0x2b8   : > { %976 = vmatmul.msk.bf16.vlgmr.msra.gmra.mxu2 %vm340_vm2, %v352_v42 }
 0x2ba   : > { %v407_v43 = vpop.xlane.xlu2 %406  ;;  %v1128_v44 = vpop.eup %1127 }
 0x2bb   : > { %1129 = vrcp.f32 %v407_v43  ;;  %v471_v46 = vmul.f32 %v1128_v44, %v1533_v5 }
 0x2bd   : > { %v472_v51 = vpack.c.bf16 %v471_v46, %v471_v46 }
 0x2c1   : > { %v1130_v45 = vpop.eup %1129 }
 0x2c2   : > { %v409_v47 = vmul.f32 %v1130_v45, %v1539_v11  ;;  %v474_v48 = vpop.permute.xlu2 %473  ;;  %v1108_v45 = vld [vmem:[%s1628_s4] ss:$0 sm:$0xff] }
 0x2c3   : > { %v479_v8 = vsel %vm358_vm3, %v474_v48, 0 }
 0x2c4   : > { %488 = vmatpush.bf16.msrb.mxu1 %v479_v8  ;;  %v536_v49 = vpop.permute.xlu1 %535  ;;  %v410_v53 = vpack.c.bf16 %v409_v47, %v409_v47 }
 0x2c5   : > { %v541_v50 = vsel %vm358_vm3, %v536_v49, 0 }
 0x2c6   : > { %550 = vmatpush.bf16.msra.mxu2 %v541_v50  ;;  %v660_v52 = vpop.permute.xlu0 %659 }
 0x2c7   : > { %980 = vmatmul.msk.bf16.vlgmr.msrb.gmra.mxu1 %vm340_vm2, %v472_v51  ;;  %v665_v54 = vsel %vm358_vm3, %v660_v52, 0 }
 0x2c8   : > { %978 = vmatmul.msk.bf16.vlgmr.msrb.gmra.mxu2 %vm340_vm2, %v410_v53 }
 0x2ca   : > { %674 = vmatpush.bf16.msrb.mxu2 %v665_v54 }
 0x2ce   : > { %v598_v55 = vpop.permute.xlu0 %597 }
 0x2cf   : > { %v603_v56 = vsel %vm358_vm3, %v598_v55, 0 }
 0x2d0   : > { %612 = vmatpush.bf16.msra.mxu1 %v603_v56 }
 0x2ef   : > { %v593_v57 = vpop.xlane.xlu1 %592 }
 0x2f0   : > { %1131 = vrcp.f32 %v593_v57 }
 0x2f6   : > { %v1132_v58 = vpop.eup %1131 }
 0x2f7   : > { %v595_v59 = vmul.f32 %v1132_v58, %v1116_v23  ;;  %v531_v60 = vpop.xlane.xlu1 %530 }
 0x2f8   : > { %1133 = vrcp.f32 %v531_v60 }
 0x2f9   : > { %v596_v61 = vpack.c.bf16 %v595_v59, %v595_v59  ;;  %v717_v0 = vpop.xlane.xlu0 %716 }
 0x2fa   : > { %1135 = vrcp.f32 %v717_v0 }
 0x2fb   : > { %v655_v62 = vpop.xlane.xlu2 %654  ;;  %984 = vmatmul.msk.bf16.vlgmr.msra.gmra.mxu1 %vm340_vm2, %v596_v61 }
 0x2fc   : > { %1137 = vrcp.f32 %v655_v62 }
 0x2fe   : > { %v1134_v63 = vpop.eup %1133 }
 0x2ff   : > { %v533_v1 = vmul.f32 %v1134_v63, %v1118_v29 }
 0x300   : > { %v1136_v4 = vpop.eup %1135 }
 0x301   : > { %v534_v2 = vpack.c.bf16 %v533_v1, %v533_v1  ;;  %v719_v6 = vmul.f32 %v1136_v4, %v1549_v30 }
 0x302   : > { %v1138_v5 = vpop.eup %1137 }
 0x303   : > { %982 = vmatmul.msk.bf16.vlgmr.msra.gmra.mxu2 %vm340_vm2, %v534_v2  ;;  %v779_v3 = vpop.xlane.xlu2 %778  ;;  %v657_v10 = vmul.f32 %v1138_v5, %v1552_v33  ;;  %v720_v11 = vpack.c.bf16 %v719_v6, %v719_v6 }
 0x304   : > { %1139 = vrcp.f32 %v779_v3 }
 0x305   : > { %v658_v14 = vpack.c.bf16 %v657_v10, %v657_v10 }
 0x30a   : > { %v1140_v15 = vpop.eup %1139 }
 0x30b   : > { %v722_v7 = vpop.permute.xlu2 %721  ;;  %v781_v16 = vmul.f32 %v1140_v15, %v1558_v36  ;;  %v1007_v36 = vld [vmem:[#allocation8 + $0x8] sm:$0xff] }
 0x30c   : > { %v727_v9 = vsel %vm358_vm3, %v722_v7, 0  ;;  %841 = vmatpush.bf16.msra.mxu0 %v1007_v36 }
 0x30d   : > { %736 = vmatpush.bf16.msrb.mxu1 %v727_v9  ;;  %v782_v17 = vpack.c.bf16 %v781_v16, %v781_v16 }
 0x30f   : > { %v784_v12 = vpop.permute.xlu1 %783 }
 0x310   : > { %v789_v13 = vsel %vm358_vm3, %v784_v12, 0  ;;  %988 = vmatmul.msk.bf16.vlgmr.msrb.gmra.mxu1 %vm340_vm2, %v720_v11  ;;  %842 = vmatpush.bf16.msra.mxu0 %v1006_v37 }
 0x311   : > { %798 = vmatpush.bf16.msra.mxu2 %v789_v13 }
 0x313   : > { %986 = vmatmul.msk.bf16.vlgmr.msrb.gmra.mxu2 %vm340_vm2, %v658_v14 }
 0x323   : > { %990 = vmatmul.msk.bf16.vlgmr.msra.gmra.mxu2 %vm340_vm2, %v782_v17 }
 0x33b   : > { %v371_v18 = vpop.f32.mrf.mxu2 }
 0x33c   : > { %375 = vst.msk [vmem:[#allocation2] sm:$0xff] %vm320_vm1, %v371_v18 }
 0x343   : > { %v373_v19 = vpop.f32.mrf.mxu2 }
 0x344   : > { %v490_v20 = vpop.f32.mrf.mxu1 }
 0x345   : > { %495 = vrot.lane.b32.xlu2 %v490_v20, %s1330_s30  ;;  %s862_s30 = sshll.u32 %s274_s29, 4  ;;  %s863_s30 = int_to_ptr.vmem [resolvable:$true] %s862_s30 }
 0x34b   : > { %v428_v21 = vpop.f32.mrf.mxu2 }
 0x34c   : > { %433 = vrot.lane.b32.xlu1 %v428_v21, %s1331_s16  ;;  %v492_v22 = vpop.f32.mrf.mxu1  ;;  %s864_s16 = sshll.u32 %s860_s13, 4  ;;  %s865_s16 = int_to_ptr.hbm [resolvable:$true] %s864_s16 }
 0x353   : > { %v430_v23 = vpop.f32.mrf.mxu2 }
 0x378   : > { %v614_v24 = vpop.f32.mrf.mxu1 }
 0x379   : > { %619 = vrot.lane.b32.xlu2 %v614_v24, %s1332_s6  ;;  %s1245_s6 = sshra.s32 %s865_s16, 4  ;;  %s1246_s6 = int_to_ptr.hbm [resolvable:$true] %s1245_s6 }
 0x37a   : > { %p1252_p12 = scmp.lt.s32.totalorder %s1246_s6, %s1629_s5 }
 0x380   : > { %v616_v25 = vpop.f32.mrf.mxu1 }
 0x386   : > { %v552_v26 = vpop.f32.mrf.mxu2 }
 0x387   : > { %557 = vrot.lane.b32.xlu1 %v552_v26, %s1333_s7  ;;  %s1247_s7 = scalar_lea.hbm %s1246_s6, 8 }
 0x388   : > { %p1248_p1 = scmp.ne.s32.totalorder %s1246_s6, %s1247_s7 }
 0x38a   : > { %p1249_p3 = pnand %p1248_p1, %p1436_p4 }
 0x38c   : > { %p1250_p5 = pneg %p1249_p3 }
 0x38d   : > { %v738_v27 = vpop.f32.mrf.mxu1 }
 0x38e   : > { %v554_v28 = vpop.f32.mrf.mxu2 }
 0x38f   : > { %743 = vrot.lane.b32.xlu1 %v738_v27, %s1334_s27 }
 0x395   : > { %v740_v29 = vpop.f32.mrf.mxu1 }
 0x396   : > { %v676_v30 = vpop.f32.mrf.mxu2 }
 0x397   : > { %681 = vrot.lane.b32.xlu0 %v676_v30, %s1335_s26 }
 0x39e   : > { %v678_v31 = vpop.f32.mrf.mxu2 }
 0x39f   : > { %v496_v35 = vpop.permute.xlu2 %495 }
 0x3a6   : > { %v800_v32 = vpop.f32.mrf.mxu2 }
 0x3a7   : > { %805 = vrot.lane.b32.xlu2 %v800_v32, %s1336_s8  ;;  %s1251_s8 = scalar_lea.hbm %s1629_s5, 16 }
 0x3a8   : > { %p1253_p7 = scmp.lt.s32.totalorder %s1251_s8, %s1247_s7 }
 0x3aa   : > { %p1254_p8 = por %p1253_p7, %p1252_p12 }
 0x3ac   : > { %p1255_p9 = pnand %p1254_p8, %p1250_p5 }
 0x3ae   : > { %v802_v33 = vpop.f32.mrf.mxu2 }
 0x3be   : > { %v434_v34 = vpop.permute.xlu1 %433 }
 0x3bf   : > { %437 = vst.msk [vmem:[#allocation2] sm:$0xff] %vm436_vm4, %v434_v34 }
 0x3c0   : > { %499 = vst.msk [vmem:[#allocation2] sm:$0xff] %vm498_vm5, %v496_v35 }
 0x3d3   : > { %v620_v39 = vpop.permute.xlu2 %619 }
 0x3f9   : > { %v558_v38 = vpop.permute.xlu1 %557 }
 0x3fa   : > { %561 = vst.msk [vmem:[#allocation2] sm:$0xff] %vm560_vm6, %v558_v38 }
 0x3fb   : > { %623 = vst.msk [vmem:[#allocation2] sm:$0xff] %vm622_vm7, %v620_v39 }
 0x401   : > { %v744_v41 = vpop.permute.xlu1 %743  ;;  %v806_v42 = vpop.permute.xlu2 %805 }
 0x409   : > { %v682_v40 = vpop.permute.xlu0 %681 }
 0x40a   : > { %685 = vst.msk [vmem:[#allocation2] sm:$0xff] %vm684_vm8, %v682_v40 }
 0x40b   : > { %747 = vst.msk [vmem:[#allocation2] sm:$0xff] %vm746_vm9, %v744_v41 }
 0x40c   : > { %809 = vst.msk [vmem:[#allocation2] sm:$0xff] %vm808_vm10, %v806_v42 }
 0x413   : > { %v810_v43 = vld [vmem:[#allocation2] sm:$0xff] }
 0x414   : > { %v811_v44 = vpack.c.bf16 %v810_v43, %v810_v43 }
 0x416   : > { %999 = vmatmul.msk.bf16.vlgmr.msra.gmra.mxu0 %vm297_vm0, %v811_v44 }
 0x493   : > { %v844_v46 = vpop.f32.mrf.mxu0 }
 0x494   : > { %v845_v47 = vadd.f32 %v1108_v45, %v844_v46 }
 0x496   : > { %848 = vst.msk [vmem:[%s274_s29] sm:$0xff] %vm297_vm0, %v845_v47 }
 0x497   : > { %1258 = shalt.err (!%p1255_p9)
}
 0x498   : > { %1018 = dma.vmem_to_hbm [thread:$0]  (%p1436_p4), %s863_s30, 128, %s865_s16, %s850_s25  }
 0x49b   : > { %v846_v48 = vpop.f32.mrf.mxu0 }
 0x49c PF: > { %s876_s22 = sand.u32 1, %s1289_s18   ;;  %p1636_p10 = scmp.ge.s32.totalorder %s1301_s21, 2 }
 0x49d   : > { %s877_s10 = scalar_lea.sflag [#allocation5], %s876_s22 }
 0x49e   : > { %p1032_p13 = pnand %p1636_p10, %p1440_p6 }
 0x4a0   : > { %p1033_p11 = pneg %p1032_p13 }
 0x4a2   : > { %1284 = dma.done.wait (%p1033_p11), %s877_s10, 128  }
 0x4a3   : > { %1286 = vsyncadd (%p1033_p11), %s877_s10, 4294967168  ;;  %p19_p0 = scmp.ge.s32.totalorder %s1410_s12, 4   ;;  %s1637_s18 = smov %s1293_s19 }
 0x4a4   : > { %s1638_s19 = smov %s1297_s20  ;;  %s1639_s20 = smov %s1421_s15 }
 0x4a5   : > { %s1640_s21 = smov %s1410_s12  ;;  %21 = sbr.rel (!%p19_p0) target bundleno = 6 (0x6), region = 93 }
 0x4aa   :  { %883 = vsyncpa [#allocation4], 1 }
 0x4ab   :  { %885 = vsyncpa [#allocation4 + $0x1], 1 }
 0x4ac   :  { %886 = vsyncpa [#allocation7], 1 }
 0x4ad   :  { %887 = vsyncpa [#allocation5], 1 }
 0x4ae   :  { %889 = vsyncpa [#allocation5 + $0x1], 1 }

</bundles_post_ra>
